<compile_context>
chip_gen: v6e
topology: v6e:2x2x1
jax: 0.10.0
libtpu: 0.0.40
codegen_flags: <defaults>
</compile_context>

<pallas_src>
import numpy as np
import jax
import jax.numpy as jnp
from jax.experimental import pallas as pl
from jax.experimental.pallas import tpu as pltpu

OUT_H = 84
OUT_W = 84


def _bilinear_matrix(out_size: int, in_size: int) -> np.ndarray:
    """Row-stochastic (out_size, in_size) bilinear interpolation matrix
    (align_corners=False convention, i.e. src = (i + 0.5) * scale - 0.5)."""
    i = np.arange(out_size, dtype=np.float64)
    src = (i + 0.5) * (in_size / out_size) - 0.5
    src = np.clip(src, 0.0, in_size - 1)
    lo = np.floor(src).astype(np.int64)
    hi = np.minimum(lo + 1, in_size - 1)
    w_hi = (src - lo).astype(np.float32)
    w_lo = 1.0 - w_hi
    mat = np.zeros((out_size, in_size), dtype=np.float32)
    mat[np.arange(out_size), lo] += w_lo
    mat[np.arange(out_size), hi] += w_hi
    return mat


def _gray_resize_matrix(out_h: int, h: int) -> np.ndarray:
    """(84, 3H) row-interp matrix with grayscale weights and 1/255 folded in."""
    rh = _bilinear_matrix(out_h, h).astype(np.float64)            # (84, H)
    wts = np.array([299.0, 587.0, 114.0], dtype=np.float64) / 1000.0
    rh_big = np.concatenate([w_c * rh for w_c in wts], axis=1)    # (84, 3H)
    return (rh_big / 255.0).astype(np.float32)


def _preprocess_kernel(x_ref, rhb_ref, rwT_ref, o_ref):
    # x_ref:   (B*3H, W)   bf16, B channel-stacked RGB images, values in [0, 255]
    # rhb_ref: (84, 3H)    bf16 row-interp matrix with grayscale + 1/255 folded in
    # rwT_ref: (W, 84)     bf16 column-interp matrix, already transposed
    # o_ref:   (B*84, 84)  f32 dense output slab
    ch = rhb_ref.shape[1]                      # 3H
    b = x_ref.shape[0] // ch
    rhb = rhb_ref[...]                         # single shared tile (no broadcast)

    # Stage 1 (cheap, per-image): grayscale + row resize, contracting 3H -> 84.
    # Unrolled loop of small bf16 matmuls; static slices -> zero-cost ref views.
    parts = []
    for i in range(b):
        xi = x_ref[pl.ds(i * ch, ch), :]                             # (3H, W)
        ti = jnp.dot(rhb, xi, preferred_element_type=jnp.float32)    # (84, W) f32 acc
        parts.append(ti.astype(jnp.bfloat16))
    t = jnp.concatenate(parts, axis=0)                               # (B*84, W)

    # Stage 2 (heavy, wide): column resize, one matmul with M = B*84.
    o_ref[...] = jnp.dot(t, rwT_ref[...], preferred_element_type=jnp.float32)


def mnist_preprocess(x: jax.Array, block_n: int = 64) -> jax.Array:
    """x: [N, 3, H, W] float32 in [0, 255] -> [N, 1, 84, 84] float32 in [0, 1]."""
    n, c, h, w = x.shape
    assert c == 3, "expected RGB NCHW input"

    # ---- block-size selection ----------------------------------------------
    # * even block_n keeps the (block_n*84, 84) output block 8-sublane aligned
    # * tiny batches shrink block_n so the grid keeps >= 2 steps (v7x: 2 TCs)
    # * cap block_n so the double-buffered per-step working set stays under
    #   v5e's 16 MiB default scoped VMEM even for large images (224x224 RGB).
    per_image_bytes = (2 * 3 * h * w * 2          # input block (bf16, double-buffered)
                       + 2 * OUT_H * OUT_W * 4    # output block (f32, double-buffered)
                       + OUT_H * w * 6)           # stage-1 intermediate (f32 + bf16)
    vmem_budget = 12 * 1024 * 1024
    bn = min(block_n, max(2, (n + 1) // 2), max(2, vmem_budget // per_image_bytes))
    bn += bn % 2                                  # force even

    # Pad the batch to a multiple of 2*bn -> even grid length (megacore balance).
    n_pad = (-n) % (2 * bn)
    if n_pad:
        x = jnp.concatenate([x, jnp.zeros((n_pad, c, h, w), x.dtype)], axis=0)
    n_total = n + n_pad

    # Free host-side reshape: (N, 3, H, W) -> (N*3H, W); each image occupies
    # 3H consecutive rows, so one (B*3H, W) block = B whole images.
    # bf16 cast halves the input DMA; pixel values 0..255 are exact in bf16.
    xf = x.astype(jnp.bfloat16).reshape(n_total * 3 * h, w)

    rh_big = jnp.asarray(_gray_resize_matrix(OUT_H, h), dtype=jnp.bfloat16)  # (84, 3H)
    rwT = jnp.asarray(_bilinear_matrix(OUT_W, w).T, dtype=jnp.bfloat16)      # (W, 84)

    flops = 2 * n_total * OUT_H * w * (3 * h + OUT_W)
    bytes_accessed = (n_total * 3 * h * w * 2            # bf16 input
                      + (rh_big.size + rwT.size) * 2     # bf16 matrices
                      + n_total * OUT_H * OUT_W * 4)     # f32 output

    out = pl.pallas_call(
        _preprocess_kernel,
        out_shape=jax.ShapeDtypeStruct((n_total * OUT_H, OUT_W), jnp.float32),
        grid_spec=pltpu.PrefetchScalarGridSpec(
            num_scalar_prefetch=0,
            grid=(n_total // bn,),
            in_specs=[
                pl.BlockSpec((bn * 3 * h, w), lambda i: (i, 0)),
                pl.BlockSpec((OUT_H, 3 * h), lambda i: (0, 0)),
                pl.BlockSpec((w, OUT_W), lambda i: (0, 0)),
            ],
            out_specs=pl.BlockSpec((bn * OUT_H, OUT_W), lambda i: (i, 0)),
        ),
        compiler_params=pltpu.CompilerParams(
            dimension_semantics=("parallel",),
        ),
        cost_estimate=pl.CostEstimate(
            flops=int(flops),
            transcendentals=0,
            bytes_accessed=int(bytes_accessed),
        ),
    )(xf, rh_big, rwT)

    out = out.reshape(n_total, OUT_H, OUT_W)[:n]   # free row-major reshape + unpad
    return out[:, None, :, :]                      # (N, 1, 84, 84)


def _reference(x: jax.Array) -> jax.Array:
    """Pure-JAX f32 reference of the same transform for a sanity check."""
    rh = jnp.asarray(_bilinear_matrix(OUT_H, x.shape[2]))
    rw = jnp.asarray(_bilinear_matrix(OUT_W, x.shape[3]))
    gray = (299.0 / 1000.0) * x[:, 0] + (587.0 / 1000.0) * x[:, 1] \
        + (114.0 / 1000.0) * x[:, 2]
    resized = jnp.einsum("oh,nhw,pw->nop", rh, gray, rw)
    return (resized / 255.0)[:, None, :, :]


if __name__ == "__main__":
    key = jax.random.PRNGKey(0)
    # 16 images of 32x32 RGB -> block_n shrinks to 8 -> grid of 2 parallel steps.
    N, C, H, W = 16, 3, 32, 32
    x = jax.random.uniform(key, (N, C, H, W), dtype=jnp.float32,
                           minval=0.0, maxval=255.0)

    out = mnist_preprocess(x)
    out = jax.block_until_ready(out)

    ref = _reference(x)
    assert out.shape == (N, 1, OUT_H, OUT_W), out.shape
    # bf16 weight/intermediate rounding only (inputs exact in bf16): <0.6% rel.
    assert jnp.allclose(out, ref, atol=5e-3, rtol=5e-3), "mismatch vs reference"

    print("KERNEL_OK")
</pallas_src>

<mosaic_0001>
module attributes {stable_mosaic.version = 11 : i64} {
  func.func @_preprocess_kernel(%arg0: i32, %arg1: memref<768x32xbf16, #tpu.memory_space<vmem>>, %arg2: memref<84x96xbf16, #tpu.memory_space<vmem>>, %arg3: memref<32x84xbf16, #tpu.memory_space<vmem>>, %arg4: memref<672x84xf32, #tpu.memory_space<vmem>>) attributes {dimension_semantics = [#tpu.dimension_semantics<parallel>], iteration_bounds = array<i64: 2>, scalar_prefetch = 0 : i64, scratch_operands = 0 : i64, tpu.core_type = #tpu.core_type<tc>, window_params = [{transform_indices = @transform_0, window_bounds = array<i64: 768, 32>}, {pipeline_mode = #tpu.pipeline_mode<synchronous>, transform_indices = @transform_1, window_bounds = array<i64: 84, 96>}, {pipeline_mode = #tpu.pipeline_mode<synchronous>, transform_indices = @transform_2, window_bounds = array<i64: 32, 84>}, {transform_indices = @transform_3, window_bounds = array<i64: 672, 84>}]} {
    %c0 = arith.constant 0 : index
    %c0_0 = arith.constant 0 : index
    %0 = vector.load %arg2[%c0, %c0_0] : memref<84x96xbf16, #tpu.memory_space<vmem>>, vector<84x96xbf16>
    %c0_1 = arith.constant 0 : index
    %c0_2 = arith.constant 0 : index
    %1 = vector.load %arg1[%c0_1, %c0_2] : memref<768x32xbf16, #tpu.memory_space<vmem>>, vector<96x32xbf16>
    %cst = arith.constant dense<0.000000e+00> : vector<84x32xf32>
    %2 = tpu.matmul %0, %1, %cst {dimension_numbers = #tpu.dot_dimension_numbers<[1], [0], [0], [1], [0, 0, 1, 1], [], []>} : vector<84x96xbf16>, vector<96x32xbf16>, vector<84x32xf32> -> vector<84x32xf32>
    %3 = arith.truncf %2 : vector<84x32xf32> to vector<84x32xbf16>
    %c96 = arith.constant 96 : index
    %c0_3 = arith.constant 0 : index
    %4 = vector.load %arg1[%c96, %c0_3] : memref<768x32xbf16, #tpu.memory_space<vmem>>, vector<96x32xbf16>
    %cst_4 = arith.constant dense<0.000000e+00> : vector<84x32xf32>
    %5 = tpu.matmul %0, %4, %cst_4 {dimension_numbers = #tpu.dot_dimension_numbers<[1], [0], [0], [1], [0, 0, 1, 1], [], []>} : vector<84x96xbf16>, vector<96x32xbf16>, vector<84x32xf32> -> vector<84x32xf32>
    %6 = arith.truncf %5 : vector<84x32xf32> to vector<84x32xbf16>
    %c192 = arith.constant 192 : index
    %c0_5 = arith.constant 0 : index
    %7 = vector.load %arg1[%c192, %c0_5] : memref<768x32xbf16, #tpu.memory_space<vmem>>, vector<96x32xbf16>
    %cst_6 = arith.constant dense<0.000000e+00> : vector<84x32xf32>
    %8 = tpu.matmul %0, %7, %cst_6 {dimension_numbers = #tpu.dot_dimension_numbers<[1], [0], [0], [1], [0, 0, 1, 1], [], []>} : vector<84x96xbf16>, vector<96x32xbf16>, vector<84x32xf32> -> vector<84x32xf32>
    %9 = arith.truncf %8 : vector<84x32xf32> to vector<84x32xbf16>
    %c288 = arith.constant 288 : index
    %c0_7 = arith.constant 0 : index
    %10 = vector.load %arg1[%c288, %c0_7] : memref<768x32xbf16, #tpu.memory_space<vmem>>, vector<96x32xbf16>
    %cst_8 = arith.constant dense<0.000000e+00> : vector<84x32xf32>
    %11 = tpu.matmul %0, %10, %cst_8 {dimension_numbers = #tpu.dot_dimension_numbers<[1], [0], [0], [1], [0, 0, 1, 1], [], []>} : vector<84x96xbf16>, vector<96x32xbf16>, vector<84x32xf32> -> vector<84x32xf32>
    %12 = arith.truncf %11 : vector<84x32xf32> to vector<84x32xbf16>
    %c384 = arith.constant 384 : index
    %c0_9 = arith.constant 0 : index
    %13 = vector.load %arg1[%c384, %c0_9] : memref<768x32xbf16, #tpu.memory_space<vmem>>, vector<96x32xbf16>
    %cst_10 = arith.constant dense<0.000000e+00> : vector<84x32xf32>
    %14 = tpu.matmul %0, %13, %cst_10 {dimension_numbers = #tpu.dot_dimension_numbers<[1], [0], [0], [1], [0, 0, 1, 1], [], []>} : vector<84x96xbf16>, vector<96x32xbf16>, vector<84x32xf32> -> vector<84x32xf32>
    %15 = arith.truncf %14 : vector<84x32xf32> to vector<84x32xbf16>
    %c480 = arith.constant 480 : index
    %c0_11 = arith.constant 0 : index
    %16 = vector.load %arg1[%c480, %c0_11] : memref<768x32xbf16, #tpu.memory_space<vmem>>, vector<96x32xbf16>
    %cst_12 = arith.constant dense<0.000000e+00> : vector<84x32xf32>
    %17 = tpu.matmul %0, %16, %cst_12 {dimension_numbers = #tpu.dot_dimension_numbers<[1], [0], [0], [1], [0, 0, 1, 1], [], []>} : vector<84x96xbf16>, vector<96x32xbf16>, vector<84x32xf32> -> vector<84x32xf32>
    %18 = arith.truncf %17 : vector<84x32xf32> to vector<84x32xbf16>
    %c576 = arith.constant 576 : index
    %c0_13 = arith.constant 0 : index
    %19 = vector.load %arg1[%c576, %c0_13] : memref<768x32xbf16, #tpu.memory_space<vmem>>, vector<96x32xbf16>
    %cst_14 = arith.constant dense<0.000000e+00> : vector<84x32xf32>
    %20 = tpu.matmul %0, %19, %cst_14 {dimension_numbers = #tpu.dot_dimension_numbers<[1], [0], [0], [1], [0, 0, 1, 1], [], []>} : vector<84x96xbf16>, vector<96x32xbf16>, vector<84x32xf32> -> vector<84x32xf32>
    %21 = arith.truncf %20 : vector<84x32xf32> to vector<84x32xbf16>
    %c672 = arith.constant 672 : index
    %c0_15 = arith.constant 0 : index
    %22 = vector.load %arg1[%c672, %c0_15] : memref<768x32xbf16, #tpu.memory_space<vmem>>, vector<96x32xbf16>
    %cst_16 = arith.constant dense<0.000000e+00> : vector<84x32xf32>
    %23 = tpu.matmul %0, %22, %cst_16 {dimension_numbers = #tpu.dot_dimension_numbers<[1], [0], [0], [1], [0, 0, 1, 1], [], []>} : vector<84x96xbf16>, vector<96x32xbf16>, vector<84x32xf32> -> vector<84x32xf32>
    %24 = arith.truncf %23 : vector<84x32xf32> to vector<84x32xbf16>
    %25 = tpu.concatenate %3, %6, %9, %12, %15, %18, %21, %24 in 0 : vector<84x32xbf16>, vector<84x32xbf16>, vector<84x32xbf16>, vector<84x32xbf16>, vector<84x32xbf16>, vector<84x32xbf16>, vector<84x32xbf16>, vector<84x32xbf16> -> vector<672x32xbf16>
    %c0_17 = arith.constant 0 : index
    %c0_18 = arith.constant 0 : index
    %26 = vector.load %arg3[%c0_17, %c0_18] : memref<32x84xbf16, #tpu.memory_space<vmem>>, vector<32x84xbf16>
    %cst_19 = arith.constant dense<0.000000e+00> : vector<672x84xf32>
    %27 = tpu.matmul %25, %26, %cst_19 {dimension_numbers = #tpu.dot_dimension_numbers<[1], [0], [0], [1], [0, 0, 1, 1], [], []>} : vector<672x32xbf16>, vector<32x84xbf16>, vector<672x84xf32> -> vector<672x84xf32>
    %c0_20 = arith.constant 0 : index
    %c0_21 = arith.constant 0 : index
    %28 = vector.load %arg4[%c0_20, %c0_21] : memref<672x84xf32, #tpu.memory_space<vmem>>, vector<672x84xf32>
    tpu.vector_store %arg4[%c0_20, %c0_21], %27 {strides = array<i32>} : memref<672x84xf32, #tpu.memory_space<vmem>>, vector<672x84xf32>,
    return
  }
  func.func @transform_0(%arg0: i32) -> (i32, i32) {
    %c0_i32 = arith.constant 0 : i32
    %c0_i32_0 = arith.constant 0 : i32
    return %arg0, %c0_i32 : i32, i32
  }
  func.func @transform_1(%arg0: i32) -> (i32, i32) {
    %c0_i32 = arith.constant 0 : i32
    %c0_i32_0 = arith.constant 0 : i32
    %c0_i32_1 = arith.constant 0 : i32
    return %c0_i32, %c0_i32_0 : i32, i32
  }
  func.func @transform_2(%arg0: i32) -> (i32, i32) {
    %c0_i32 = arith.constant 0 : i32
    %c0_i32_0 = arith.constant 0 : i32
    %c0_i32_1 = arith.constant 0 : i32
    return %c0_i32, %c0_i32_0 : i32, i32
  }
  func.func @transform_3(%arg0: i32) -> (i32, i32) {
    %c0_i32 = arith.constant 0 : i32
    %c0_i32_0 = arith.constant 0 : i32
    return %arg0, %c0_i32 : i32, i32
  }
}

</mosaic_0001>

<bundles_post_ra>
// kernel: tpu_custom_call.1
= control target key start
LH: loop header
LB: loop body
LE: loop exit
PB: predicated region body
PF: predicated region fallthrough
CT: control target
= control target key end

     0   :  { %s2749_s12 = smov 0   ;;  %s3261_s0 = inlined_call_operand.vmem [shape: bf16[1536,32], index: 0, kind: input, shape index: {}]   ;;  %s3262_s1 = inlined_call_operand.vmem [shape: bf16[84,96], index: 1, kind: input, shape index: {}]   ;;  %s3263_s2 = inlined_call_operand.vmem [shape: bf16[32,84], index: 2, kind: input, shape index: {}]   ;;  %s3264_s3 = inlined_call_operand.vmem [shape: f32[1344,84], index: 3, kind: output, shape index: {}]  }
   0x1 LB: > { %s2078_s13 = sadd.s32 4294967295, %s2727_s12   ;;  %p2082_p0 = scmp.ge.s32.totalorder %s2727_s12, 1  ;;  %s2727_s12 = sphi %s2749_s12, %s13_s12  }
   0x2   : > { %p138_p1 = scmp.lt.s32.totalorder %s2727_s12, 3 }
   0x4   : > { %p139_p2 = pnand %p2082_p0, %p138_p1 }
   0x5   : > { %s162_s14 = smul.u32 (!%p139_p2), 96, %s2078_s13 }
   0x6   : > { %142 = sbr.rel (%p139_p2) target bundleno = 568 (0x238), region = 32 }
   0x7   : > { %p163_p3 = scmp.lt.s32.totalorder (!%p139_p2), %s162_s14, 191  ;;  %s168_s8 = smul.u32 (!%p139_p2), 84, %s2078_s13 }
   0x9   : > { %p169_p4 = scmp.lt.s32.totalorder (!%p139_p2), %s168_s8, 167 }
   0xb   : > { %v2762_v0 = vld [vmem:[%s3262_s1] sm:$0xff]   ;;  %vm262_vm0 = vcmask 785408   ;;  %s3266_s14 = smov (!%p163_p3, %s162_s14), 191  ;;  %v2789_v14 = vld [vmem:[%s3262_s1 + $0x8] sm:$0xff]   ;;  %v2795_v16 = vld [vmem:[%s3262_s1 + $0x10] sm:$0xff]   ;;  %vm1447_vm1 = vcmask 261120  }
   0xc   : > { %2385 = vmatprep.mubr.msk.bf16.mxu0 %vm262_vm0, %v2762_v0  ;;  %2409 = vmatprep.mubr.msk.bf16.mxu1 %vm262_vm0, %v2762_v0  ;;  %s2083_s17 = sshll.u32 %s3266_s14, 2  ;;  %v2809_v20 = vld [vmem:[%s3262_s1 + $0x18] sm:$0xff]   ;;  %v2817_v22 = vld [vmem:[%s3262_s1 + $0x20] sm:$0xff]   ;;  %v2830_v25 = vld [vmem:[%s3262_s1 + $0x28] ss:$0 sps:$4 sm:$0x33]  }
   0xd   : > { %s2771_s20 = scalar_lea.vmem %s3261_s0, %s2083_s17  ;;  %v2719_v54 = vld [vmem:[%s3263_s2 + $0x8] sm:$0xff]   ;;  %v2720_v55 = vld [vmem:[%s3263_s2] sm:$0xff]   ;;  %vm1311_vm2 = vcmask 1041408   ;;  %vm1329_vm3 = vcmask 1043456   ;;  %vm1347_vm4 = vcmask 1045504   ;;  %s3268_s8 = smov (!%p169_p4, %s168_s8), 167 }
   0xe   : > { %v2665_v1 = vld [vmem:[%s2771_s20 + $0x28] sm:$0xff]   ;;  %v2666_v2 = vld [vmem:[%s2771_s20 + $0x20] sm:$0xff]   ;;  %v2667_v3 = vld [vmem:[%s2771_s20 + $0x58] sm:$0xff]   ;;  %s2084_s9 = sshll.u32 %s3268_s8, 3  ;;  %vm1937_vm5 = vcmask 687104  }
   0xf   : > { %2373 = vmatprep.subr.bf16.mxu0 %v2665_v1  ;;  %v2668_v4 = vld [vmem:[%s2771_s20 + $0x18] sm:$0xff]   ;;  %2397 = vmatprep.subr.bf16.mxu1 %v2667_v3  ;;  %v2669_v5 = vld [vmem:[%s2771_s20 + $0x50] sm:$0xff]   ;;  %v2671_v6 = vld [vmem:[%s2771_s20 + $0x48] sm:$0xff]   ;;  %s3088_s14 = scalar_lea.vmem %s3264_s3, %s2084_s9 }
  0x10   : > { %2374 = vmatpush3.bf16.msra.mxu0 %v2665_v1  ;;  %2398 = vmatpush3.bf16.msra.mxu1 %v2667_v3  ;;  %v2670_v7 = vld [vmem:[%s2771_s20 + $0x10] sm:$0xff]   ;;  %v2673_v8 = vld [vmem:[%s2771_s20 + $0x40] sm:$0xff]   ;;  %v2672_v9 = vld [vmem:[%s2771_s20 + $0x8] sm:$0xff]  }
  0x11   : > { %2375 = vmatprep.subr.bf16.mxu0 %v2666_v2  ;;  %2399 = vmatprep.subr.bf16.mxu1 %v2669_v5  ;;  %v2676_v10 = vld [vmem:[%s2771_s20 + $0x38] sm:$0xff]   ;;  %v2674_v11 = vld [vmem:[%s2771_s20] sm:$0xff]   ;;  %v2679_v12 = vld [vmem:[%s2771_s20 + $0x30] sm:$0xff]  }
  0x12   : > { %v2678_v13 = vld [vmem:[%s2771_s20 + $0x88] sm:$0xff]   ;;  %v2682_v15 = vld [vmem:[%s2771_s20 + $0xb8] sm:$0xff]   ;;  %v2680_v17 = vld [vmem:[%s2771_s20 + $0x80] sm:$0xff]  }
  0x13   : > { %v2685_v18 = vld [vmem:[%s2771_s20 + $0xb0] sm:$0xff]   ;;  %v2684_v19 = vld [vmem:[%s2771_s20 + $0x78] sm:$0xff]   ;;  %v2688_v21 = vld [vmem:[%s2771_s20 + $0xa8] sm:$0xff]  }
  0x14   : > { %2376 = vmatpush3.bf16.msra.mxu0 %v2666_v2  ;;  %2400 = vmatpush3.bf16.msra.mxu1 %v2669_v5  ;;  %v2686_v23 = vld [vmem:[%s2771_s20 + $0x70] sm:$0xff]   ;;  %v2691_v24 = vld [vmem:[%s2771_s20 + $0xa0] sm:$0xff]   ;;  %v2690_v26 = vld [vmem:[%s2771_s20 + $0x68] sm:$0xff]  }
  0x15   : > { %2377 = vmatprep.subr.bf16.mxu0 %v2668_v4  ;;  %2401 = vmatprep.subr.bf16.mxu1 %v2671_v6  ;;  %v2693_v27 = vld [vmem:[%s2771_s20 + $0x98] sm:$0xff]   ;;  %v2692_v28 = vld [vmem:[%s2771_s20 + $0x60] sm:$0xff]   ;;  %v2695_v29 = vld [vmem:[%s2771_s20 + $0x90] sm:$0xff]  }
  0x16   : > { %v2694_v30 = vld [vmem:[%s2771_s20 + $0xe8] sm:$0xff]   ;;  %v2697_v31 = vld [vmem:[%s2771_s20 + $0x118] sm:$0xff]   ;;  %v2696_v32 = vld [vmem:[%s2771_s20 + $0xe0] sm:$0xff]  }
  0x17   : > { %v2699_v33 = vld [vmem:[%s2771_s20 + $0x110] sm:$0xff]   ;;  %v2698_v34 = vld [vmem:[%s2771_s20 + $0xd8] sm:$0xff]   ;;  %v2701_v35 = vld [vmem:[%s2771_s20 + $0x108] sm:$0xff]  }
  0x18   : > { %2378 = vmatpush3.bf16.msra.mxu0 %v2668_v4  ;;  %2402 = vmatpush3.bf16.msra.mxu1 %v2671_v6  ;;  %v2700_v36 = vld [vmem:[%s2771_s20 + $0xd0] sm:$0xff]   ;;  %v2703_v37 = vld [vmem:[%s2771_s20 + $0x100] sm:$0xff]   ;;  %v2702_v38 = vld [vmem:[%s2771_s20 + $0xc8] sm:$0xff]  }
  0x19   : > { %2379 = vmatprep.subr.bf16.mxu0 %v2670_v7  ;;  %2403 = vmatprep.subr.bf16.mxu1 %v2673_v8  ;;  %v2705_v39 = vld [vmem:[%s2771_s20 + $0xf8] sm:$0xff]   ;;  %v2704_v40 = vld [vmem:[%s2771_s20 + $0xc0] sm:$0xff]   ;;  %v2707_v41 = vld [vmem:[%s2771_s20 + $0xf0] sm:$0xff]  }
  0x1a   : > { %v2706_v42 = vld [vmem:[%s2771_s20 + $0x148] sm:$0xff]   ;;  %v2713_v43 = vld [vmem:[%s2771_s20 + $0x178] sm:$0xff]   ;;  %v2708_v44 = vld [vmem:[%s2771_s20 + $0x140] sm:$0xff]  }
  0x1b   : > { %v2714_v45 = vld [vmem:[%s2771_s20 + $0x170] sm:$0xff]   ;;  %v2709_v46 = vld [vmem:[%s2771_s20 + $0x138] sm:$0xff]   ;;  %v2715_v47 = vld [vmem:[%s2771_s20 + $0x168] sm:$0xff]  }
  0x1c   : > { %2380 = vmatpush3.bf16.msra.mxu0 %v2670_v7  ;;  %2404 = vmatpush3.bf16.msra.mxu1 %v2673_v8  ;;  %v2710_v48 = vld [vmem:[%s2771_s20 + $0x130] sm:$0xff]   ;;  %v2716_v49 = vld [vmem:[%s2771_s20 + $0x160] sm:$0xff]   ;;  %v2711_v50 = vld [vmem:[%s2771_s20 + $0x128] sm:$0xff]  }
  0x1d   : > { %2381 = vmatprep.subr.bf16.mxu0 %v2672_v9  ;;  %2405 = vmatprep.subr.bf16.mxu1 %v2676_v10  ;;  %v2717_v51 = vld [vmem:[%s2771_s20 + $0x158] sm:$0xff]   ;;  %v2712_v52 = vld [vmem:[%s2771_s20 + $0x120] sm:$0xff]   ;;  %v2718_v53 = vld [vmem:[%s2771_s20 + $0x150] sm:$0xff]  }
  0x20   : > { %2382 = vmatpush3.bf16.msra.mxu0 %v2672_v9  ;;  %2406 = vmatpush3.bf16.msra.mxu1 %v2676_v10 }
  0x21   : > { %2383 = vmatprep.subr.bf16.mxu0 %v2674_v11  ;;  %2407 = vmatprep.subr.bf16.mxu1 %v2679_v12 }
  0x24   : > { %2384 = vmatpush3.bf16.msra.mxu0 %v2674_v11  ;;  %2408 = vmatpush3.bf16.msra.mxu1 %v2679_v12 }
  0x25   : > { %2421 = vmatprep.subr.bf16.mxu0 %v2678_v13  ;;  %2445 = vmatprep.subr.bf16.mxu1 %v2682_v15 }
  0x27   : > { %2386 = vmatmul.mubr.msk.bf16.vlgmr.msra.gmra.mxu0 %vm262_vm0, %v2789_v14  ;;  %2410 = vmatmul.mubr.msk.bf16.vlgmr.msra.gmra.mxu1 %vm262_vm0, %v2789_v14 }
  0x28   : > { %2422 = vmatpush3.bf16.msra.mxu0 %v2678_v13  ;;  %2389 = vmatprep.mubr.msk.bf16.mxu0 %vm262_vm0, %v2795_v16 }
  0x29   : > { %2423 = vmatprep.subr.bf16.mxu0 %v2680_v17  ;;  %2446 = vmatpush3.bf16.msra.mxu1 %v2682_v15 }
  0x2a   : > { %2413 = vmatprep.mubr.msk.bf16.mxu1 %vm262_vm0, %v2795_v16  ;;  %2447 = vmatprep.subr.bf16.mxu1 %v2685_v18 }
  0x2c   : > { %2424 = vmatpush3.bf16.msra.mxu0 %v2680_v17 }
  0x2d   : > { %2425 = vmatprep.subr.bf16.mxu0 %v2684_v19  ;;  %2448 = vmatpush3.bf16.msra.mxu1 %v2685_v18 }
  0x2e   : > { %2449 = vmatprep.subr.bf16.mxu1 %v2688_v21 }
  0x2f   : > { %2390 = vmatmul.mubr.msk.bf16.gmra.mxu0 %vm262_vm0, %v2809_v20  ;;  %2414 = vmatmul.mubr.msk.bf16.gmra.mxu1 %vm262_vm0, %v2809_v20 }
  0x30   : > { %2426 = vmatpush3.bf16.msra.mxu0 %v2684_v19  ;;  %2393 = vmatprep.mubr.msk.bf16.mxu0 %vm262_vm0, %v2817_v22 }
  0x31   : > { %2427 = vmatprep.subr.bf16.mxu0 %v2686_v23  ;;  %2450 = vmatpush3.bf16.msra.mxu1 %v2688_v21 }
  0x32   : > { %2417 = vmatprep.mubr.msk.bf16.mxu1 %vm262_vm0, %v2817_v22  ;;  %2451 = vmatprep.subr.bf16.mxu1 %v2691_v24 }
  0x34   : > { %2428 = vmatpush3.bf16.msra.mxu0 %v2686_v23 }
  0x35   : > { %2429 = vmatprep.subr.bf16.mxu0 %v2690_v26  ;;  %2452 = vmatpush3.bf16.msra.mxu1 %v2691_v24 }
  0x36   : > { %2453 = vmatprep.subr.bf16.mxu1 %v2693_v27 }
  0x37   : > { %2394 = vmatmul.mubr.msk.bf16.gmra.mxu0 %vm262_vm0, %v2830_v25  ;;  %2418 = vmatmul.mubr.msk.bf16.gmra.mxu1 %vm262_vm0, %v2830_v25 }
  0x38   : > { %2430 = vmatpush3.bf16.msra.mxu0 %v2690_v26  ;;  %2433 = vmatprep.mubr.msk.bf16.mxu0 %vm262_vm0, %v2762_v0 }
  0x39   : > { %2431 = vmatprep.subr.bf16.mxu0 %v2692_v28  ;;  %2454 = vmatpush3.bf16.msra.mxu1 %v2693_v27 }
  0x3a   : > { %2457 = vmatprep.mubr.msk.bf16.mxu1 %vm262_vm0, %v2762_v0  ;;  %2455 = vmatprep.subr.bf16.mxu1 %v2695_v29 }
  0x3c   : > { %2432 = vmatpush3.bf16.msra.mxu0 %v2692_v28 }
  0x3d   : > { %2469 = vmatprep.subr.bf16.mxu0 %v2694_v30  ;;  %2456 = vmatpush3.bf16.msra.mxu1 %v2695_v29 }
  0x3e   : > { %2493 = vmatprep.subr.bf16.mxu1 %v2697_v31 }
  0x3f   : > { %2434 = vmatmul.mubr.msk.bf16.vlgmr.msra.gmra.mxu0 %vm262_vm0, %v2789_v14 }
  0x40   : > { %2470 = vmatpush3.bf16.msra.mxu0 %v2694_v30  ;;  %2437 = vmatprep.mubr.msk.bf16.mxu0 %vm262_vm0, %v2795_v16 }
  0x41   : > { %2471 = vmatprep.subr.bf16.mxu0 %v2696_v32  ;;  %2458 = vmatmul.mubr.msk.bf16.vlgmr.msra.gmra.mxu1 %vm262_vm0, %v2789_v14 }
  0x42   : > { %2494 = vmatpush3.bf16.msra.mxu1 %v2697_v31  ;;  %2461 = vmatprep.mubr.msk.bf16.mxu1 %vm262_vm0, %v2795_v16 }
  0x43   : > { %2495 = vmatprep.subr.bf16.mxu1 %v2699_v33 }
  0x44   : > { %2472 = vmatpush3.bf16.msra.mxu0 %v2696_v32 }
  0x45   : > { %2473 = vmatprep.subr.bf16.mxu0 %v2698_v34 }
  0x46   : > { %2496 = vmatpush3.bf16.msra.mxu1 %v2699_v33 }
  0x47   : > { %2438 = vmatmul.mubr.msk.bf16.gmra.mxu0 %vm262_vm0, %v2809_v20  ;;  %2497 = vmatprep.subr.bf16.mxu1 %v2701_v35 }
  0x48   : > { %2474 = vmatpush3.bf16.msra.mxu0 %v2698_v34  ;;  %2441 = vmatprep.mubr.msk.bf16.mxu0 %vm262_vm0, %v2817_v22 }
  0x49   : > { %2475 = vmatprep.subr.bf16.mxu0 %v2700_v36  ;;  %2462 = vmatmul.mubr.msk.bf16.gmra.mxu1 %vm262_vm0, %v2809_v20 }
  0x4a   : > { %2498 = vmatpush3.bf16.msra.mxu1 %v2701_v35  ;;  %2465 = vmatprep.mubr.msk.bf16.mxu1 %vm262_vm0, %v2817_v22 }
  0x4b   : > { %2499 = vmatprep.subr.bf16.mxu1 %v2703_v37 }
  0x4c   : > { %2476 = vmatpush3.bf16.msra.mxu0 %v2700_v36 }
  0x4d   : > { %2477 = vmatprep.subr.bf16.mxu0 %v2702_v38 }
  0x4e   : > { %2500 = vmatpush3.bf16.msra.mxu1 %v2703_v37 }
  0x4f   : > { %2442 = vmatmul.mubr.msk.bf16.gmra.mxu0 %vm262_vm0, %v2830_v25  ;;  %2501 = vmatprep.subr.bf16.mxu1 %v2705_v39 }
  0x50   : > { %2478 = vmatpush3.bf16.msra.mxu0 %v2702_v38  ;;  %2481 = vmatprep.mubr.msk.bf16.mxu0 %vm262_vm0, %v2762_v0 }
  0x51   : > { %2479 = vmatprep.subr.bf16.mxu0 %v2704_v40  ;;  %2466 = vmatmul.mubr.msk.bf16.gmra.mxu1 %vm262_vm0, %v2830_v25 }
  0x52   : > { %2502 = vmatpush3.bf16.msra.mxu1 %v2705_v39  ;;  %2505 = vmatprep.mubr.msk.bf16.mxu1 %vm262_vm0, %v2762_v0 }
  0x53   : > { %2503 = vmatprep.subr.bf16.mxu1 %v2707_v41 }
  0x54   : > { %2480 = vmatpush3.bf16.msra.mxu0 %v2704_v40 }
  0x55   : > { %2517 = vmatprep.subr.bf16.mxu0 %v2706_v42 }
  0x56   : > { %2504 = vmatpush3.bf16.msra.mxu1 %v2707_v41 }
  0x57   : > { %2482 = vmatmul.mubr.msk.bf16.vlgmr.msra.gmra.mxu0 %vm262_vm0, %v2789_v14  ;;  %2541 = vmatprep.subr.bf16.mxu1 %v2713_v43 }
  0x58   : > { %2518 = vmatpush3.bf16.msra.mxu0 %v2706_v42  ;;  %2485 = vmatprep.mubr.msk.bf16.mxu0 %vm262_vm0, %v2795_v16 }
  0x59   : > { %2519 = vmatprep.subr.bf16.mxu0 %v2708_v44  ;;  %2506 = vmatmul.mubr.msk.bf16.vlgmr.msra.gmra.mxu1 %vm262_vm0, %v2789_v14 }
  0x5a   : > { %2509 = vmatprep.mubr.msk.bf16.mxu1 %vm262_vm0, %v2795_v16  ;;  %2542 = vmatpush3.bf16.msra.mxu1 %v2713_v43 }
  0x5b   : > { %2543 = vmatprep.subr.bf16.mxu1 %v2714_v45 }
  0x5c   : > { %2520 = vmatpush3.bf16.msra.mxu0 %v2708_v44 }
  0x5d   : > { %2521 = vmatprep.subr.bf16.mxu0 %v2709_v46 }
  0x5e   : > { %2544 = vmatpush3.bf16.msra.mxu1 %v2714_v45 }
  0x5f   : > { %2486 = vmatmul.mubr.msk.bf16.gmra.mxu0 %vm262_vm0, %v2809_v20  ;;  %2545 = vmatprep.subr.bf16.mxu1 %v2715_v47 }
  0x60   : > { %2522 = vmatpush3.bf16.msra.mxu0 %v2709_v46  ;;  %2489 = vmatprep.mubr.msk.bf16.mxu0 %vm262_vm0, %v2817_v22 }
  0x61   : > { %2523 = vmatprep.subr.bf16.mxu0 %v2710_v48  ;;  %2510 = vmatmul.mubr.msk.bf16.gmra.mxu1 %vm262_vm0, %v2809_v20 }
  0x62   : > { %2513 = vmatprep.mubr.msk.bf16.mxu1 %vm262_vm0, %v2817_v22  ;;  %2546 = vmatpush3.bf16.msra.mxu1 %v2715_v47 }
  0x63   : > { %2547 = vmatprep.subr.bf16.mxu1 %v2716_v49 }
  0x64   : > { %2524 = vmatpush3.bf16.msra.mxu0 %v2710_v48 }
  0x65   : > { %2525 = vmatprep.subr.bf16.mxu0 %v2711_v50 }
  0x66   : > { %2548 = vmatpush3.bf16.msra.mxu1 %v2716_v49 }
  0x67   : > { %2490 = vmatmul.mubr.msk.bf16.gmra.mxu0 %vm262_vm0, %v2830_v25  ;;  %2549 = vmatprep.subr.bf16.mxu1 %v2717_v51 }
  0x68   : > { %2526 = vmatpush3.bf16.msra.mxu0 %v2711_v50  ;;  %2529 = vmatprep.mubr.msk.bf16.mxu0 %vm262_vm0, %v2762_v0 }
  0x69   : > { %2527 = vmatprep.subr.bf16.mxu0 %v2712_v52  ;;  %2514 = vmatmul.mubr.msk.bf16.gmra.mxu1 %vm262_vm0, %v2830_v25 }
  0x6a   : > { %2550 = vmatpush3.bf16.msra.mxu1 %v2717_v51  ;;  %2553 = vmatprep.mubr.msk.bf16.mxu1 %vm262_vm0, %v2762_v0 }
  0x6b   : > { %2551 = vmatprep.subr.bf16.mxu1 %v2718_v53 }
  0x6c   : > { %2528 = vmatpush3.bf16.msra.mxu0 %v2712_v52 }
  0x6d   : > { %2565 = vmatprep.subr.bf16.mxu0 %v2719_v54 }
  0x6e   : > { %2552 = vmatpush3.bf16.msra.mxu1 %v2718_v53 }
  0x6f   : > { %2530 = vmatmul.mubr.msk.bf16.vlgmr.msra.gmra.mxu0 %vm262_vm0, %v2789_v14  ;;  %2653 = vmatprep.subr.bf16.mxu1 %v2719_v54 }
  0x70   : > { %2533 = vmatprep.mubr.msk.bf16.mxu0 %vm262_vm0, %v2795_v16  ;;  %2566 = vmatpush3.bf16.msra.mxu0 %v2719_v54 }
  0x71   : > { %2554 = vmatmul.mubr.msk.bf16.vlgmr.msra.gmra.mxu1 %vm262_vm0, %v2789_v14  ;;  %2567 = vmatprep.subr.bf16.mxu0 %v2720_v55 }
  0x72   : > { %2557 = vmatprep.mubr.msk.bf16.mxu1 %vm262_vm0, %v2795_v16  ;;  %2655 = vmatpush3.bf16.msra.mxu1 %v2719_v54 }
  0x73   : > { %2654 = vmatprep.subr.bf16.mxu1 %v2720_v55 }
  0x74   : > { %2568 = vmatpush3.bf16.msra.mxu0 %v2720_v55 }
  0x76   : > { %2656 = vmatpush3.bf16.msra.mxu1 %v2720_v55 }
  0x77   : > { %2534 = vmatmul.mubr.msk.bf16.gmra.mxu0 %vm262_vm0, %v2809_v20 }
  0x78   : > { %2537 = vmatprep.mubr.msk.bf16.mxu0 %vm262_vm0, %v2817_v22 }
  0x79   : > { %2558 = vmatmul.mubr.msk.bf16.gmra.mxu1 %vm262_vm0, %v2809_v20 }
  0x7a   : > { %2561 = vmatprep.mubr.msk.bf16.mxu1 %vm262_vm0, %v2817_v22 }
  0x7f   : > { %2538 = vmatmul.mubr.msk.bf16.gmra.mxu0 %vm262_vm0, %v2830_v25 }
  0x81   : > { %2562 = vmatmul.mubr.msk.bf16.gmra.mxu1 %vm262_vm0, %v2830_v25 }
  0xe7   : > { %v2387_v56 = vpop.f32.mrf.mxu0  ;;  %v2411_v58 = vpop.f32.mrf.mxu1 }
  0xe9   : > { %v315_v57 = vpop.f32.mrf.mxu0  ;;  %v449_v60 = vpop.f32.mrf.mxu1 }
  0xeb   : > { %v2388_v59 = vpop.f32.mrf.mxu0  ;;  %v2412_v62 = vpop.f32.mrf.mxu1 }
  0xec   : > { %v362_v0 = vpack.c.bf16 %v2388_v59, %v2387_v56  ;;  %v496_v10 = vpack.c.bf16 %v2412_v62, %v2411_v58 }
  0xed   : > { %v318_v61 = vpop.f32.mrf.mxu0  ;;  %v452_v2 = vpop.f32.mrf.mxu1 }
  0xee   : > { %v361_v63 = vpack.c.bf16 %v318_v61, %v315_v57  ;;  %v495_v14 = vpack.c.bf16 %v452_v2, %v449_v60  ;;  %v1313_v17 = vrot.slane %v496_v10, 6 }
  0xef   : > { %v2391_v1 = vpop.f32.mrf.mxu0  ;;  %v2415_v4 = vpop.f32.mrf.mxu1 }
  0xf0   : > { %2569 = vmatprep.mubr.msk.bf16.mxu0 %vm1447_vm1, %v361_v63  ;;  %v1312_v20 = vrot.slane %v495_v14, 6 }
  0xf1   : > { %v331_v3 = vpop.f32.mrf.mxu0  ;;  %2570 = vmatmul.mubr.msk.bf16.vlgmr.msra.gmra.mxu0 %vm1447_vm1, %v362_v0  ;;  %v465_v6 = vpop.f32.mrf.mxu1 }
  0xf2   : > { %v1314_v27 = vsel %vm1311_vm2, %v1312_v20, %v1313_v17 }
  0xf3   : > { %v2392_v5 = vpop.f32.mrf.mxu0  ;;  %v2416_v8 = vpop.f32.mrf.mxu1 }
  0xf4   : > { %v364_v11 = vpack.c.bf16 %v2392_v5, %v2391_v1  ;;  %v498_v25 = vpack.c.bf16 %v2416_v8, %v2415_v4 }
  0xf5   : > { %v334_v7 = vpop.f32.mrf.mxu0  ;;  %v468_v13 = vpop.f32.mrf.mxu1 }
  0xf6   : > { %v363_v9 = vpack.c.bf16 %v334_v7, %v331_v3  ;;  %v497_v29 = vpack.c.bf16 %v468_v13, %v465_v6  ;;  %v1317_v33 = vrot.slane %v498_v25, 6 }
  0xf7   : > { %v2395_v12 = vpop.f32.mrf.mxu0  ;;  %v2419_v16 = vpop.f32.mrf.mxu1 }
  0xf8   : > { %2573 = vmatprep.mubr.msk.bf16.mxu0 %vm1447_vm1, %v363_v9  ;;  %v366_v21 = vpack.c.bf16 %v2395_v12, %v2395_v12  ;;  %v1315_v36 = vrot.slane %v497_v29, 6  ;;  %v500_v39 = vpack.c.bf16 %v2419_v16, %v2419_v16 }
  0xf9   : > { %v347_v15 = vpop.f32.mrf.mxu0  ;;  %2574 = vmatmul.mubr.msk.bf16.gmra.mxu0 %vm1447_vm1, %v364_v11  ;;  %v481_v19 = vpop.f32.mrf.mxu1 }
  0xfa   : > { %v1413_v30 = vsel %vm1311_vm2, %v366_v21, %v1312_v20  ;;  %v1318_v42 = vsel %vm1311_vm2, %v1315_v36, %v1317_v33  ;;  %v1316_v44 = vsel %vm1311_vm2, %v1313_v17, %v1315_v36  ;;  %v1321_v48 = vrot.slane %v500_v39, 6 }
  0xfb   : > { %v2396_v18 = vpop.f32.mrf.mxu0  ;;  %v2420_v23 = vpop.f32.mrf.mxu1 }
  0xfd   : > { %v350_v22 = vpop.f32.mrf.mxu0  ;;  %v484_v28 = vpop.f32.mrf.mxu1 }
  0xfe   : > { %v365_v24 = vpack.c.bf16 %v350_v22, %v347_v15  ;;  %v499_v40 = vpack.c.bf16 %v484_v28, %v481_v19 }
  0xff   : > { %v2435_v26 = vpop.f32.mrf.mxu0 }
 0x100   : > { %2577 = vmatprep.mubr.msk.bf16.mxu0 %vm1447_vm1, %v365_v24  ;;  %v1319_v49 = vrot.slane %v499_v40, 6 }
 0x101   : > { %v583_v31 = vpop.f32.mrf.mxu0  ;;  %2578 = vmatmul.mubr.msk.bf16.gmra.mxu0 %vm1447_vm1, %v1413_v30  ;;  %v2952_v32 = vpop.f32.mrf.mxu1 }
 0x102   : > { %2581 = vmatprep.mubr.msk.bf16.mxu0 %vm1447_vm1, %v1314_v27  ;;  %v1322_v55 = vsel %vm1311_vm2, %v1319_v49, %v1321_v48  ;;  %v1320_v58 = vsel %vm1311_vm2, %v1317_v33, %v1319_v49 }
 0x103   : > { %v2436_v34 = vpop.f32.mrf.mxu0  ;;  %v2955_v35 = vpop.f32.mrf.mxu1 }
 0x104   : > { %v630_v63 = vpack.c.bf16 %v2436_v34, %v2435_v26 }
 0x105   : > { %v586_v37 = vpop.f32.mrf.mxu0  ;;  %v2957_v38 = vpop.f32.mrf.mxu1 }
 0x106   : > { %v629_v45 = vpack.c.bf16 %v586_v37, %v583_v31  ;;  %v1331_v5 = vrot.slane %v630_v63, 4  ;;  %v764_v25 = vpack.c.bf16 %v2957_v38, %v2952_v32 }
 0x107   : > { %v2439_v41 = vpop.f32.mrf.mxu0  ;;  %v2960_v43 = vpop.f32.mrf.mxu1 }
 0x108   : > { %v1330_v52 = vrot.slane %v629_v45, 4  ;;  %v763_v26 = vpack.c.bf16 %v2960_v43, %v2955_v35  ;;  %v1349_v34 = vrot.slane %v764_v25, 2 }
 0x109   : > { %v599_v46 = vpop.f32.mrf.mxu0  ;;  %2582 = vmatmul.mubr.msk.bf16.gmra.mxu0 %vm1447_vm1, %v1316_v44  ;;  %v2964_v47 = vpop.f32.mrf.mxu1 }
 0x10a   : > { %2585 = vmatprep.mubr.msk.bf16.mxu0 %vm1447_vm1, %v1318_v42  ;;  %v1417_v61 = vsel %vm1329_vm3, %v1322_v55, %v1330_v52  ;;  %v1332_v8 = vsel %vm1329_vm3, %v1330_v52, %v1331_v5  ;;  %v1348_v36 = vrot.slane %v763_v26, 2 }
 0x10b   : > { %v2440_v50 = vpop.f32.mrf.mxu0  ;;  %v2967_v51 = vpop.f32.mrf.mxu1 }
 0x10c   : > { %v632_v13 = vpack.c.bf16 %v2440_v50, %v2439_v41  ;;  %v1350_v48 = vsel %vm1347_vm4, %v1348_v36, %v1349_v34 }
 0x10d   : > { %v602_v53 = vpop.f32.mrf.mxu0  ;;  %v2969_v54 = vpop.f32.mrf.mxu1 }
 0x10e   : > { %v631_v59 = vpack.c.bf16 %v602_v53, %v599_v46  ;;  %v1335_v20 = vrot.slane %v632_v13, 4  ;;  %v766_v45 = vpack.c.bf16 %v2969_v54, %v2964_v47 }
 0x10f   : > { %v2443_v56 = vpop.f32.mrf.mxu0  ;;  %v2972_v57 = vpop.f32.mrf.mxu1 }
 0x110   : > { %v1333_v2 = vrot.slane %v631_v59, 4  ;;  %v634_v21 = vpack.c.bf16 %v2443_v56, %v2443_v56  ;;  %v765_v42 = vpack.c.bf16 %v2972_v57, %v2967_v51  ;;  %v1353_v56 = vrot.slane %v766_v45, 2 }
 0x111   : > { %v615_v60 = vpop.f32.mrf.mxu0  ;;  %2586 = vmatmul.mubr.msk.bf16.gmra.mxu0 %vm1447_vm1, %v1320_v58  ;;  %v2977_v62 = vpop.f32.mrf.mxu1 }
 0x112   : > { %2589 = vmatprep.mubr.msk.bf16.mxu0 %vm1447_vm1, %v1417_v61  ;;  %v1334_v11 = vsel %vm1329_vm3, %v1331_v5, %v1333_v2  ;;  %v1336_v24 = vsel %vm1329_vm3, %v1333_v2, %v1335_v20  ;;  %v1339_v30 = vrot.slane %v634_v21, 4  ;;  %v1351_v52 = vrot.slane %v765_v42, 2 }
 0x113   : > { %v2444_v0 = vpop.f32.mrf.mxu0  ;;  %v2980_v1 = vpop.f32.mrf.mxu1 }
 0x114   : > { %v1352_v0 = vsel %vm1347_vm4, %v1349_v34, %v1351_v52  ;;  %v1354_v5 = vsel %vm1347_vm4, %v1351_v52, %v1353_v56 }
 0x115   : > { %v618_v3 = vpop.f32.mrf.mxu0  ;;  %v2468_v4 = vpop.f32.mrf.mxu1 }
 0x116   : > { %v633_v9 = vpack.c.bf16 %v618_v3, %v615_v60  ;;  %v768_v3 = vpack.c.bf16 %v2977_v62, %v2977_v62 }
 0x117   : > { %v2483_v6 = vpop.f32.mrf.mxu0  ;;  %v2982_v7 = vpop.f32.mrf.mxu1 }
 0x118   : > { %v1337_v17 = vrot.slane %v633_v9, 4  ;;  %v767_v61 = vpack.c.bf16 %v2982_v7, %v2980_v1 }
 0x119   : > { %v2985_v10 = vpop.f32.mrf.mxu0  ;;  %2590 = vmatmul.mubr.msk.bf16.gmra.mxu0 %vm1447_vm1, %v1332_v8  ;;  %v2989_v12 = vpop.f32.mrf.mxu1 }
 0x11a   : > { %2593 = vmatprep.mubr.msk.bf16.mxu0 %vm1447_vm1, %v1334_v11  ;;  %v1338_v28 = vsel %vm1329_vm3, %v1335_v20, %v1337_v17  ;;  %v1340_v37 = vsel %vm1329_vm3, %v1337_v17, %v1339_v30  ;;  %v1355_v9 = vrot.slane %v767_v61, 2 }
 0x11b   : > { %v2484_v14 = vpop.f32.mrf.mxu0  ;;  %v985_v15 = vpop.f32.mrf.mxu1  ;;  %v1421_v44 = vsel %vm1347_vm4, %v1340_v37, %v1348_v36 }
 0x11c   : > { %v898_v16 = vpack.c.bf16 %v2484_v14, %v2483_v6  ;;  %v1356_v20 = vsel %vm1347_vm4, %v1353_v56, %v1355_v9 }
 0x11d   : > { %v2992_v18 = vpop.f32.mrf.mxu0  ;;  %v2508_v19 = vpop.f32.mrf.mxu1 }
 0x11e   : > { %2613 = vmatprep.mubr.msk.bf16.mxu1 %vm1447_vm1, %v898_v16  ;;  %v1032_v47 = vpack.c.bf16 %v2508_v19, %v2989_v12  ;;  %v1357_v12 = vrot.slane %v768_v3, 2 }
 0x11f   : > { %v2487_v22 = vpop.f32.mrf.mxu0  ;;  %v988_v23 = vpop.f32.mrf.mxu1 }
 0x120   : > { %v1031_v43 = vpack.c.bf16 %v988_v23, %v985_v15  ;;  %v1366_v1 = vrot.slane %v1032_v47, 6  ;;  %v1358_v23 = vsel %vm1347_vm4, %v1355_v9, %v1357_v12 }
 0x121   : > { %v867_v27 = vpop.f32.mrf.mxu0  ;;  %2594 = vmatmul.mubr.msk.bf16.gmra.mxu0 %vm1447_vm1, %v1336_v24  ;;  %v3002_v29 = vpop.f32.mrf.mxu1 }
 0x122   : > { %2597 = vmatprep.mubr.msk.bf16.mxu0 %vm1447_vm1, %v1338_v28  ;;  %v1365_v53 = vrot.slane %v1031_v43, 6 }
 0x123   : > { %v2488_v31 = vpop.f32.mrf.mxu0  ;;  %v1001_v33 = vpop.f32.mrf.mxu1 }
 0x124   : > { %v900_v39 = vpack.c.bf16 %v2488_v31, %v2487_v22  ;;  %v1367_v16 = vsel %vm1311_vm2, %v1365_v53, %v1366_v1 }
 0x125   : > { %v870_v32 = vpop.f32.mrf.mxu0  ;;  %v3006_v38 = vpop.f32.mrf.mxu1 }
 0x126   : > { %v899_v35 = vpack.c.bf16 %v870_v32, %v867_v27  ;;  %v1034_v14 = vpack.c.bf16 %v3006_v38, %v3002_v29 }
 0x127   : > { %v2491_v40 = vpop.f32.mrf.mxu0  ;;  %v1004_v41 = vpop.f32.mrf.mxu1 }
 0x128   : > { %2614 = vmatmul.mubr.msk.bf16.vlgmr.msra.gmra.mxu1 %vm1447_vm1, %v899_v35  ;;  %v902_v55 = vpack.c.bf16 %v2491_v40, %v2491_v40  ;;  %v1033_v63 = vpack.c.bf16 %v1004_v41, %v1001_v33  ;;  %v1370_v25 = vrot.slane %v1034_v14, 6  ;;  %v897_v33 = vpack.c.bf16 %v2992_v18, %v2985_v10 }
 0x129   : > { %v883_v46 = vpop.f32.mrf.mxu0  ;;  %2598 = vmatmul.mubr.msk.bf16.gmra.mxu0 %vm1447_vm1, %v1421_v44  ;;  %2617 = vmatprep.mubr.msk.bf16.mxu1 %vm1447_vm1, %v900_v39  ;;  %v2515_v49 = vpop.f32.mrf.mxu1 }
 0x12a   : > { %2601 = vmatprep.mubr.msk.bf16.mxu0 %vm1447_vm1, %v1350_v48  ;;  %v1424_v2 = vsel %vm1311_vm2, %v902_v55, %v1365_v53  ;;  %v1368_v11 = vrot.slane %v1033_v63, 6  ;;  %v1036_v28 = vpack.c.bf16 %v2515_v49, %v2515_v49 }
 0x12b   : > { %v2492_v50 = vpop.f32.mrf.mxu0  ;;  %v1017_v51 = vpop.f32.mrf.mxu1 }
 0x12c   : > { %v1369_v21 = vsel %vm1311_vm2, %v1366_v1, %v1368_v11  ;;  %v1371_v37 = vsel %vm1311_vm2, %v1368_v11, %v1370_v25  ;;  %v1374_v38 = vrot.slane %v1036_v28, 6 }
 0x12d   : > { %v886_v57 = vpop.f32.mrf.mxu0  ;;  %v2516_v58 = vpop.f32.mrf.mxu1 }
 0x12e   : > { %v901_v59 = vpack.c.bf16 %v886_v57, %v883_v46 }
 0x12f   : > { %v2531_v54 = vpop.f32.mrf.mxu0  ;;  %v1020_v60 = vpop.f32.mrf.mxu1 }
 0x130   : > { %2618 = vmatmul.mubr.msk.bf16.gmra.mxu1 %vm1447_vm1, %v901_v59  ;;  %v1035_v19 = vpack.c.bf16 %v1020_v60, %v1017_v51 }
 0x131   : > { %v1119_v4 = vpop.f32.mrf.mxu0  ;;  %2602 = vmatmul.mubr.msk.bf16.gmra.mxu0 %vm1447_vm1, %v1352_v0  ;;  %2621 = vmatprep.mubr.msk.bf16.mxu1 %vm1447_vm1, %v1424_v2  ;;  %v3029_v6 = vpop.f32.mrf.mxu1 }
 0x132   : > { %2605 = vmatprep.mubr.msk.bf16.mxu0 %vm1447_vm1, %v1354_v5  ;;  %v1372_v29 = vrot.slane %v1035_v19, 6 }
 0x133   : > { %v2532_v7 = vpop.f32.mrf.mxu0  ;;  %v3032_v8 = vpop.f32.mrf.mxu1 }
 0x134   : > { %v1166_v35 = vpack.c.bf16 %v2532_v7, %v2531_v54  ;;  %v1373_v39 = vsel %vm1311_vm2, %v1370_v25, %v1372_v29  ;;  %v1375_v44 = vsel %vm1311_vm2, %v1372_v29, %v1374_v38 }
 0x135   : > { %v1122_v13 = vpop.f32.mrf.mxu0  ;;  %v3034_v62 = vpop.f32.mrf.mxu1 }
 0x136   : > { %v1165_v34 = vpack.c.bf16 %v1122_v13, %v1119_v4  ;;  %v1383_v18 = vrot.slane %v1166_v35, 4  ;;  %v1300_v63 = vpack.c.bf16 %v3034_v62, %v3029_v6 }
 0x137   : > { %v2535_v15 = vpop.f32.mrf.mxu0  ;;  %v1256_v17 = vpop.f32.mrf.mxu1 }
 0x138   : > { %2622 = vmatmul.mubr.msk.bf16.gmra.mxu1 %vm1447_vm1, %v1367_v16  ;;  %v1382_v42 = vrot.slane %v1165_v34, 4  ;;  %v1299_v58 = vpack.c.bf16 %v1256_v17, %v3032_v8  ;;  %v1400_v4 = vrot.slane %v1300_v63, 2 }
 0x139   : > { %v1135_v22 = vpop.f32.mrf.mxu0  ;;  %2606 = vmatmul.mubr.msk.bf16.gmra.mxu0 %vm1447_vm1, %v1356_v20  ;;  %2625 = vmatprep.mubr.msk.bf16.mxu1 %vm1447_vm1, %v1369_v21  ;;  %v3045_v24 = vpop.f32.mrf.mxu1 }
 0x13a   : > { %2609 = vmatprep.mubr.msk.bf16.mxu0 %vm1447_vm1, %v1358_v23  ;;  %v1427_v48 = vsel %vm1329_vm3, %v1375_v44, %v1382_v42  ;;  %v1384_v50 = vsel %vm1329_vm3, %v1382_v42, %v1383_v18  ;;  %v1399_v60 = vrot.slane %v1299_v58, 2 }
 0x13b   : > { %v2536_v26 = vpop.f32.mrf.mxu0  ;;  %v1269_v27 = vpop.f32.mrf.mxu1 }
 0x13c   : > { %v1168_v49 = vpack.c.bf16 %v2536_v26, %v2535_v15  ;;  %v1401_v8 = vsel %vm1347_vm4, %v1399_v60, %v1400_v4 }
 0x13d   : > { %v1138_v30 = vpop.f32.mrf.mxu0  ;;  %v2560_v31 = vpop.f32.mrf.mxu1 }
 0x13e   : > { %v1167_v46 = vpack.c.bf16 %v1138_v30, %v1135_v22  ;;  %v1387_v52 = vrot.slane %v1168_v49, 4  ;;  %v1302_v7 = vpack.c.bf16 %v2560_v31, %v3045_v24 }
 0x13f   : > { %v2539_v36 = vpop.f32.mrf.mxu0  ;;  %v1272_v32 = vpop.f32.mrf.mxu1 }
 0x140   : > { %2626 = vmatmul.mubr.msk.bf16.gmra.mxu1 %vm1447_vm1, %v1371_v37  ;;  %v1385_v51 = vrot.slane %v1167_v46, 4  ;;  %v1170_v55 = vpack.c.bf16 %v2539_v36, %v2539_v36  ;;  %v1301_v2 = vpack.c.bf16 %v1272_v32, %v1269_v27  ;;  %v1404_v11 = vrot.slane %v1302_v7, 2 }
 0x141   : > { %v1151_v40 = vpop.f32.mrf.mxu0  ;;  %2610 = vmatmul.mubr.msk.bf16.gmra.mxu0 %vm1447_vm1, %v897_v33  ;;  %2629 = vmatprep.mubr.msk.bf16.mxu1 %vm1447_vm1, %v1373_v39  ;;  %v2563_v41 = vpop.f32.mrf.mxu1 }
 0x142   : > { %v1386_v57 = vsel %vm1329_vm3, %v1383_v18, %v1385_v51  ;;  %v1388_v59 = vsel %vm1329_vm3, %v1385_v51, %v1387_v52  ;;  %v1391_v47 = vrot.slane %v1170_v55, 4  ;;  %v1402_v5 = vrot.slane %v1301_v2, 2 }
 0x143   : > { %v2540_v43 = vpop.f32.mrf.mxu0  ;;  %v1285_v10 = vpop.f32.mrf.mxu1  ;;  %v1304_v13 = vpack.c.bf16 %v2563_v41, %v2563_v41 }
 0x144   : > { %v1403_v6 = vsel %vm1347_vm4, %v1400_v4, %v1402_v5  ;;  %v1405_v62 = vsel %vm1347_vm4, %v1402_v5, %v1404_v11 }
 0x145   : > { %v2564_v45 = vpop.f32.mrf.mxu1  ;;  %v1154_v53 = vpop.f32.mrf.mxu0  ;;  %v1408_v15 = vrot.slane %v1304_v13, 2 }
 0x146   : > { %v1169_v56 = vpack.c.bf16 %v1154_v53, %v1151_v40 }
 0x147   : > { %v1288_v1 = vpop.f32.mrf.mxu1 }
 0x148   : > { %2630 = vmatmul.mubr.msk.bf16.gmra.mxu1 %vm1447_vm1, %v1427_v48  ;;  %v1389_v54 = vrot.slane %v1169_v56, 4  ;;  %v1303_v9 = vpack.c.bf16 %v1288_v1, %v1285_v10 }
 0x149   : > { %2633 = vmatprep.mubr.msk.bf16.mxu1 %vm1447_vm1, %v1384_v50 }
 0x14a   : > { %v1392_v61 = vsel %vm1329_vm3, %v1389_v54, %v1391_v47  ;;  %v1390_v0 = vsel %vm1329_vm3, %v1387_v52, %v1389_v54  ;;  %v1406_v12 = vrot.slane %v1303_v9, 2 }
 0x14b   : > { %v1430_v3 = vsel %vm1347_vm4, %v1392_v61, %v1399_v60 }
 0x14c   : > { %v1407_v14 = vsel %vm1347_vm4, %v1404_v11, %v1406_v12  ;;  %v1409_v16 = vsel %vm1347_vm4, %v1406_v12, %v1408_v15 }
 0x150   : > { %2634 = vmatmul.mubr.msk.bf16.gmra.mxu1 %vm1447_vm1, %v1386_v57 }
 0x151   : > { %2637 = vmatprep.mubr.msk.bf16.mxu1 %vm1447_vm1, %v1388_v59 }
 0x158   : > { %2638 = vmatmul.mubr.msk.bf16.gmra.mxu1 %vm1447_vm1, %v1390_v0 }
 0x159   : > { %2641 = vmatprep.mubr.msk.bf16.mxu1 %vm1447_vm1, %v1430_v3 }
 0x160   : > { %2642 = vmatmul.mubr.msk.bf16.gmra.mxu1 %vm1447_vm1, %v1401_v8 }
 0x161   : > { %2645 = vmatprep.mubr.msk.bf16.mxu1 %vm1447_vm1, %v1403_v6 }
 0x168   : > { %2646 = vmatmul.mubr.msk.bf16.gmra.mxu1 %vm1447_vm1, %v1405_v62 }
 0x169   : > { %2649 = vmatprep.mubr.msk.bf16.mxu1 %vm1447_vm1, %v1407_v14 }
 0x170   : > { %2650 = vmatmul.mubr.msk.bf16.gmra.mxu1 %vm1447_vm1, %v1409_v16 }
 0x1b1   : > { %v2571_v17 = vpop.f32.mrf.mxu0 }
 0x1b2   : > { %1940 = vst.msk [vmem:[%s3088_s14 + $0x10] sm:$0xff] %vm1937_vm5, %v2571_v17 }
 0x1b3   : > { %v1602_v19 = vpop.f32.mrf.mxu0 }
 0x1b4   : > { %1938 = vst.msk [vmem:[%s3088_s14] sm:$0xff] %vm1937_vm5, %v1602_v19 }
 0x1b5   : > { %v2572_v20 = vpop.f32.mrf.mxu0 }
 0x1b6   : > { %1941 = vst.msk [vmem:[%s3088_s14 + $0x18] sm:$0xff] %vm1937_vm5, %v2572_v20 }
 0x1b7   : > { %v1605_v21 = vpop.f32.mrf.mxu0 }
 0x1b8   : > { %1939 = vst.msk [vmem:[%s3088_s14 + $0x8] sm:$0xff] %vm1937_vm5, %v1605_v21 }
 0x1b9   : > { %v2575_v22 = vpop.f32.mrf.mxu0 }
 0x1ba   : > { %1944 = vst.msk [vmem:[%s3088_s14 + $0x30] sm:$0xff] %vm1937_vm5, %v2575_v22 }
 0x1bb   : > { %v1618_v23 = vpop.f32.mrf.mxu0 }
 0x1bc   : > { %1942 = vst.msk [vmem:[%s3088_s14 + $0x20] sm:$0xff] %vm1937_vm5, %v1618_v23 }
 0x1bd   : > { %v2576_v24 = vpop.f32.mrf.mxu0 }
 0x1be   : > { %1945 = vst.msk [vmem:[%s3088_s14 + $0x38] sm:$0xff] %vm1937_vm5, %v2576_v24 }
 0x1bf   : > { %v1621_v25 = vpop.f32.mrf.mxu0 }
 0x1c0   : > { %1943 = vst.msk [vmem:[%s3088_s14 + $0x28] sm:$0xff] %vm1937_vm5, %v1621_v25 }
 0x1c1   : > { %v2579_v26 = vpop.f32.mrf.mxu0 }
 0x1c2   : > { %1948 = vst.msk [vmem:[%s3088_s14 + $0x50] sm:$0xff] %vm1937_vm5, %v2579_v26 }
 0x1c3   : > { %v1634_v27 = vpop.f32.mrf.mxu0 }
 0x1c4   : > { %1946 = vst.msk [vmem:[%s3088_s14 + $0x40] sm:$0xff] %vm1937_vm5, %v1634_v27 }
 0x1c5   : > { %v2580_v28 = vpop.f32.mrf.mxu0 }
 0x1c6   : > { %1949 = vst.msk [vmem:[%s3088_s14 + $0x58] sm:$0xff] %vm1937_vm5, %v2580_v28 }
 0x1c7   : > { %v1637_v29 = vpop.f32.mrf.mxu0 }
 0x1c8   : > { %1947 = vst.msk [vmem:[%s3088_s14 + $0x48] sm:$0xff] %vm1937_vm5, %v1637_v29 }
 0x1c9   : > { %v2583_v30 = vpop.f32.mrf.mxu0 }
 0x1ca   : > { %1952 = vst.msk [vmem:[%s3088_s14 + $0x70] sm:$0xff] %vm1937_vm5, %v2583_v30 }
 0x1cb   : > { %v1650_v31 = vpop.f32.mrf.mxu0 }
 0x1cc   : > { %1950 = vst.msk [vmem:[%s3088_s14 + $0x60] sm:$0xff] %vm1937_vm5, %v1650_v31 }
 0x1cd   : > { %v2584_v33 = vpop.f32.mrf.mxu0 }
 0x1ce   : > { %1953 = vst.msk [vmem:[%s3088_s14 + $0x78] sm:$0xff] %vm1937_vm5, %v2584_v33 }
 0x1cf   : > { %v1653_v34 = vpop.f32.mrf.mxu0 }
 0x1d0   : > { %1951 = vst.msk [vmem:[%s3088_s14 + $0x68] sm:$0xff] %vm1937_vm5, %v1653_v34 }
 0x1d1   : > { %v2587_v36 = vpop.f32.mrf.mxu0 }
 0x1d2   : > { %1956 = vst.msk [vmem:[%s3088_s14 + $0x90] sm:$0xff] %vm1937_vm5, %v2587_v36 }
 0x1d3   : > { %v1666_v37 = vpop.f32.mrf.mxu0 }
 0x1d4   : > { %1954 = vst.msk [vmem:[%s3088_s14 + $0x80] sm:$0xff] %vm1937_vm5, %v1666_v37 }
 0x1d5   : > { %v2588_v32 = vpop.f32.mrf.mxu0 }
 0x1d6   : > { %1957 = vst.msk [vmem:[%s3088_s14 + $0x98] sm:$0xff] %vm1937_vm5, %v2588_v32 }
 0x1d7   : > { %v1669_v38 = vpop.f32.mrf.mxu0 }
 0x1d8   : > { %1955 = vst.msk [vmem:[%s3088_s14 + $0x88] sm:$0xff] %vm1937_vm5, %v1669_v38 }
 0x1d9   : > { %v2591_v35 = vpop.f32.mrf.mxu0 }
 0x1da   : > { %1960 = vst.msk [vmem:[%s3088_s14 + $0xb0] sm:$0xff] %vm1937_vm5, %v2591_v35 }
 0x1db   : > { %v1682_v39 = vpop.f32.mrf.mxu0 }
 0x1dc   : > { %1958 = vst.msk [vmem:[%s3088_s14 + $0xa0] sm:$0xff] %vm1937_vm5, %v1682_v39 }
 0x1dd   : > { %v2592_v40 = vpop.f32.mrf.mxu0 }
 0x1de   : > { %1961 = vst.msk [vmem:[%s3088_s14 + $0xb8] sm:$0xff] %vm1937_vm5, %v2592_v40 }
 0x1df   : > { %v1685_v41 = vpop.f32.mrf.mxu0 }
 0x1e0   : > { %1959 = vst.msk [vmem:[%s3088_s14 + $0xa8] sm:$0xff] %vm1937_vm5, %v1685_v41 }
 0x1e1   : > { %v2595_v42 = vpop.f32.mrf.mxu0 }
 0x1e2   : > { %1964 = vst.msk [vmem:[%s3088_s14 + $0xd0] sm:$0xff] %vm1937_vm5, %v2595_v42 }
 0x1e3   : > { %v1698_v43 = vpop.f32.mrf.mxu0 }
 0x1e4   : > { %1962 = vst.msk [vmem:[%s3088_s14 + $0xc0] sm:$0xff] %vm1937_vm5, %v1698_v43 }
 0x1e5   : > { %v2596_v10 = vpop.f32.mrf.mxu0 }
 0x1e6   : > { %1965 = vst.msk [vmem:[%s3088_s14 + $0xd8] sm:$0xff] %vm1937_vm5, %v2596_v10 }
 0x1e7   : > { %v1701_v18 = vpop.f32.mrf.mxu0 }
 0x1e8   : > { %1963 = vst.msk [vmem:[%s3088_s14 + $0xc8] sm:$0xff] %vm1937_vm5, %v1701_v18  ;;  %v2615_v44 = vpop.f32.mrf.mxu1 }
 0x1e9   : > { %1984 = vst.msk [vmem:[%s3088_s14 + $0x170] sm:$0xff] %vm1937_vm5, %v2615_v44  ;;  %v2599_v45 = vpop.f32.mrf.mxu0 }
 0x1ea   : > { %1968 = vst.msk [vmem:[%s3088_s14 + $0xf0] sm:$0xff] %vm1937_vm5, %v2599_v45  ;;  %v1778_v46 = vpop.f32.mrf.mxu1 }
 0x1eb   : > { %1982 = vst.msk [vmem:[%s3088_s14 + $0x160] sm:$0xff] %vm1937_vm5, %v1778_v46  ;;  %v1714_v48 = vpop.f32.mrf.mxu0 }
 0x1ec   : > { %1966 = vst.msk [vmem:[%s3088_s14 + $0xe0] sm:$0xff] %vm1937_vm5, %v1714_v48  ;;  %v2616_v49 = vpop.f32.mrf.mxu1 }
 0x1ed   : > { %1985 = vst.msk [vmem:[%s3088_s14 + $0x178] sm:$0xff] %vm1937_vm5, %v2616_v49  ;;  %v2600_v50 = vpop.f32.mrf.mxu0 }
 0x1ee   : > { %1969 = vst.msk [vmem:[%s3088_s14 + $0xf8] sm:$0xff] %vm1937_vm5, %v2600_v50  ;;  %v1781_v51 = vpop.f32.mrf.mxu1 }
 0x1ef   : > { %1983 = vst.msk [vmem:[%s3088_s14 + $0x168] sm:$0xff] %vm1937_vm5, %v1781_v51  ;;  %v1717_v52 = vpop.f32.mrf.mxu0 }
 0x1f0   : > { %1967 = vst.msk [vmem:[%s3088_s14 + $0xe8] sm:$0xff] %vm1937_vm5, %v1717_v52  ;;  %v2619_v53 = vpop.f32.mrf.mxu1 }
 0x1f1   : > { %1988 = vst.msk [vmem:[%s3088_s14 + $0x190] sm:$0xff] %vm1937_vm5, %v2619_v53  ;;  %v2603_v55 = vpop.f32.mrf.mxu0 }
 0x1f2   : > { %1972 = vst.msk [vmem:[%s3088_s14 + $0x110] sm:$0xff] %vm1937_vm5, %v2603_v55  ;;  %v1794_v56 = vpop.f32.mrf.mxu1 }
 0x1f3   : > { %1986 = vst.msk [vmem:[%s3088_s14 + $0x180] sm:$0xff] %vm1937_vm5, %v1794_v56  ;;  %v1730_v57 = vpop.f32.mrf.mxu0 }
 0x1f4   : > { %1970 = vst.msk [vmem:[%s3088_s14 + $0x100] sm:$0xff] %vm1937_vm5, %v1730_v57  ;;  %v2620_v58 = vpop.f32.mrf.mxu1 }
 0x1f5   : > { %1989 = vst.msk [vmem:[%s3088_s14 + $0x198] sm:$0xff] %vm1937_vm5, %v2620_v58  ;;  %v2604_v59 = vpop.f32.mrf.mxu0 }
 0x1f6   : > { %1973 = vst.msk [vmem:[%s3088_s14 + $0x118] sm:$0xff] %vm1937_vm5, %v2604_v59  ;;  %v1797_v47 = vpop.f32.mrf.mxu1 }
 0x1f7   : > { %1987 = vst.msk [vmem:[%s3088_s14 + $0x188] sm:$0xff] %vm1937_vm5, %v1797_v47  ;;  %v1733_v54 = vpop.f32.mrf.mxu0 }
 0x1f8   : > { %1971 = vst.msk [vmem:[%s3088_s14 + $0x108] sm:$0xff] %vm1937_vm5, %v1733_v54  ;;  %v2623_v60 = vpop.f32.mrf.mxu1 }
 0x1f9   : > { %1992 = vst.msk [vmem:[%s3088_s14 + $0x1b0] sm:$0xff] %vm1937_vm5, %v2623_v60  ;;  %v2607_v61 = vpop.f32.mrf.mxu0 }
 0x1fa   : > { %1976 = vst.msk [vmem:[%s3088_s14 + $0x130] sm:$0xff] %vm1937_vm5, %v2607_v61  ;;  %v1810_v63 = vpop.f32.mrf.mxu1 }
 0x1fb   : > { %1990 = vst.msk [vmem:[%s3088_s14 + $0x1a0] sm:$0xff] %vm1937_vm5, %v1810_v63  ;;  %v1746_v0 = vpop.f32.mrf.mxu0 }
 0x1fc   : > { %1974 = vst.msk [vmem:[%s3088_s14 + $0x120] sm:$0xff] %vm1937_vm5, %v1746_v0  ;;  %v2624_v2 = vpop.f32.mrf.mxu1 }
 0x1fd   : > { %1993 = vst.msk [vmem:[%s3088_s14 + $0x1b8] sm:$0xff] %vm1937_vm5, %v2624_v2  ;;  %v2608_v3 = vpop.f32.mrf.mxu0 }
 0x1fe   : > { %1977 = vst.msk [vmem:[%s3088_s14 + $0x138] sm:$0xff] %vm1937_vm5, %v2608_v3  ;;  %v1813_v4 = vpop.f32.mrf.mxu1 }
 0x1ff   : > { %1991 = vst.msk [vmem:[%s3088_s14 + $0x1a8] sm:$0xff] %vm1937_vm5, %v1813_v4  ;;  %v1749_v5 = vpop.f32.mrf.mxu0 }
 0x200   : > { %1975 = vst.msk [vmem:[%s3088_s14 + $0x128] sm:$0xff] %vm1937_vm5, %v1749_v5  ;;  %v2627_v1 = vpop.f32.mrf.mxu1 }
 0x201   : > { %1996 = vst.msk [vmem:[%s3088_s14 + $0x1d0] sm:$0xff] %vm1937_vm5, %v2627_v1  ;;  %v2611_v7 = vpop.f32.mrf.mxu0 }
 0x202   : > { %1980 = vst.msk [vmem:[%s3088_s14 + $0x150] sm:$0xff] %vm1937_vm5, %v2611_v7  ;;  %v1826_v8 = vpop.f32.mrf.mxu1 }
 0x203   : > { %1994 = vst.msk [vmem:[%s3088_s14 + $0x1c0] sm:$0xff] %vm1937_vm5, %v1826_v8  ;;  %v1762_v9 = vpop.f32.mrf.mxu0 }
 0x204   : > { %1978 = vst.msk [vmem:[%s3088_s14 + $0x140] sm:$0xff] %vm1937_vm5, %v1762_v9  ;;  %v2628_v6 = vpop.f32.mrf.mxu1 }
 0x205   : > { %1997 = vst.msk [vmem:[%s3088_s14 + $0x1d8] sm:$0xff] %vm1937_vm5, %v2628_v6  ;;  %v2612_v11 = vpop.f32.mrf.mxu0 }
 0x206   : > { %1981 = vst.msk [vmem:[%s3088_s14 + $0x158] sm:$0xff] %vm1937_vm5, %v2612_v11  ;;  %v1829_v12 = vpop.f32.mrf.mxu1 }
 0x207   : > { %1995 = vst.msk [vmem:[%s3088_s14 + $0x1c8] sm:$0xff] %vm1937_vm5, %v1829_v12  ;;  %v1765_v13 = vpop.f32.mrf.mxu0 }
 0x208   : > { %1979 = vst.msk [vmem:[%s3088_s14 + $0x148] sm:$0xff] %vm1937_vm5, %v1765_v13  ;;  %v2631_v62 = vpop.f32.mrf.mxu1 }
 0x209   : > { %2000 = vst.msk [vmem:[%s3088_s14 + $0x1f0] sm:$0xff] %vm1937_vm5, %v2631_v62 }
 0x20a   : > { %v1842_v14 = vpop.f32.mrf.mxu1 }
 0x20b   : > { %1998 = vst.msk [vmem:[%s3088_s14 + $0x1e0] sm:$0xff] %vm1937_vm5, %v1842_v14 }
 0x20c   : > { %v2632_v15 = vpop.f32.mrf.mxu1 }
 0x20d   : > { %2001 = vst.msk [vmem:[%s3088_s14 + $0x1f8] sm:$0xff] %vm1937_vm5, %v2632_v15 }
 0x20e   : > { %v1845_v16 = vpop.f32.mrf.mxu1 }
 0x20f   : > { %1999 = vst.msk [vmem:[%s3088_s14 + $0x1e8] sm:$0xff] %vm1937_vm5, %v1845_v16 }
 0x210   : > { %v2635_v17 = vpop.f32.mrf.mxu1 }
 0x211   : > { %2004 = vst.msk [vmem:[%s3088_s14 + $0x210] sm:$0xff] %vm1937_vm5, %v2635_v17 }
 0x212   : > { %v1858_v19 = vpop.f32.mrf.mxu1 }
 0x213   : > { %2002 = vst.msk [vmem:[%s3088_s14 + $0x200] sm:$0xff] %vm1937_vm5, %v1858_v19 }
 0x214   : > { %v2636_v20 = vpop.f32.mrf.mxu1 }
 0x215   : > { %2005 = vst.msk [vmem:[%s3088_s14 + $0x218] sm:$0xff] %vm1937_vm5, %v2636_v20 }
 0x216   : > { %v1861_v21 = vpop.f32.mrf.mxu1 }
 0x217   : > { %2003 = vst.msk [vmem:[%s3088_s14 + $0x208] sm:$0xff] %vm1937_vm5, %v1861_v21 }
 0x218   : > { %v2639_v22 = vpop.f32.mrf.mxu1 }
 0x219   : > { %2008 = vst.msk [vmem:[%s3088_s14 + $0x230] sm:$0xff] %vm1937_vm5, %v2639_v22 }
 0x21a   : > { %v1874_v23 = vpop.f32.mrf.mxu1 }
 0x21b   : > { %2006 = vst.msk [vmem:[%s3088_s14 + $0x220] sm:$0xff] %vm1937_vm5, %v1874_v23 }
 0x21c   : > { %v2640_v24 = vpop.f32.mrf.mxu1 }
 0x21d   : > { %2009 = vst.msk [vmem:[%s3088_s14 + $0x238] sm:$0xff] %vm1937_vm5, %v2640_v24 }
 0x21e   : > { %v1877_v25 = vpop.f32.mrf.mxu1 }
 0x21f   : > { %2007 = vst.msk [vmem:[%s3088_s14 + $0x228] sm:$0xff] %vm1937_vm5, %v1877_v25 }
 0x220   : > { %v2643_v26 = vpop.f32.mrf.mxu1 }
 0x221   : > { %2012 = vst.msk [vmem:[%s3088_s14 + $0x250] sm:$0xff] %vm1937_vm5, %v2643_v26 }
 0x222   : > { %v1890_v27 = vpop.f32.mrf.mxu1 }
 0x223   : > { %2010 = vst.msk [vmem:[%s3088_s14 + $0x240] sm:$0xff] %vm1937_vm5, %v1890_v27 }
 0x224   : > { %v2644_v28 = vpop.f32.mrf.mxu1 }
 0x225   : > { %2013 = vst.msk [vmem:[%s3088_s14 + $0x258] sm:$0xff] %vm1937_vm5, %v2644_v28 }
 0x226   : > { %v1893_v29 = vpop.f32.mrf.mxu1 }
 0x227   : > { %2011 = vst.msk [vmem:[%s3088_s14 + $0x248] sm:$0xff] %vm1937_vm5, %v1893_v29 }
 0x228   : > { %v2647_v30 = vpop.f32.mrf.mxu1 }
 0x229   : > { %2016 = vst.msk [vmem:[%s3088_s14 + $0x270] sm:$0xff] %vm1937_vm5, %v2647_v30 }
 0x22a   : > { %v1906_v31 = vpop.f32.mrf.mxu1 }
 0x22b   : > { %2014 = vst.msk [vmem:[%s3088_s14 + $0x260] sm:$0xff] %vm1937_vm5, %v1906_v31 }
 0x22c   : > { %v2648_v33 = vpop.f32.mrf.mxu1 }
 0x22d   : > { %2017 = vst.msk [vmem:[%s3088_s14 + $0x278] sm:$0xff] %vm1937_vm5, %v2648_v33 }
 0x22e   : > { %v1909_v34 = vpop.f32.mrf.mxu1 }
 0x22f   : > { %2015 = vst.msk [vmem:[%s3088_s14 + $0x268] sm:$0xff] %vm1937_vm5, %v1909_v34 }
 0x230   : > { %v2651_v36 = vpop.f32.mrf.mxu1 }
 0x231   : > { %2020 = vst.msk [vmem:[%s3088_s14 + $0x290] sm:$0xff] %vm1937_vm5, %v2651_v36 }
 0x232   : > { %v1922_v37 = vpop.f32.mrf.mxu1 }
 0x233   : > { %2018 = vst.msk [vmem:[%s3088_s14 + $0x280] sm:$0xff] %vm1937_vm5, %v1922_v37 }
 0x234   : > { %v2652_v32 = vpop.f32.mrf.mxu1 }
 0x235   : > { %2021 = vst.msk [vmem:[%s3088_s14 + $0x298] sm:$0xff] %vm1937_vm5, %v2652_v32 }
 0x236   : > { %v1925_v38 = vpop.f32.mrf.mxu1 }
 0x237   : > { %2019 = vst.msk [vmem:[%s3088_s14 + $0x288] sm:$0xff] %vm1937_vm5, %v1925_v38 }
 0x238 PF: > { %s13_s12 = sadd.s32 1, %s2727_s12  }
 0x239   : > { %p10_p5 = scmp.ge.s32.totalorder %s13_s12, 4  }
 0x23b   :  { %12 = sbr.rel (!%p10_p5) target bundleno = 1 (0x1), region = 62 }

</bundles_post_ra>
